<compile_context>
chip_gen: v5e
topology: v5e:2x2
jax: 0.10.0
libtpu: 0.0.40
codegen_flags: <defaults>
</compile_context>

<pallas_src>
import jax
import jax.numpy as jnp
from jax.experimental import pallas as pl
from jax.experimental.pallas import tpu as pltpu

EPS = 1e-5


def _stencil_channels(x_ref, w_ref, cout, ho, wo, kh, kw):
    """Build the k x k stencil from shifted windows of the padded image.

    x_ref: (1, Hp, Wp) VMEM block (one padded image).
    w_ref: (Cout, kh*kw) SMEM table of conv weights.
    Returns a list of Cout arrays of shape (ho, wo) (conv output per channel,
    bias intentionally omitted: it cancels under BatchNorm mean subtraction).
    """
    # 9 shifted windows, loaded once and reused across all output channels.
    wins = [x_ref[0, di:di + ho, dj:dj + wo] for di in range(kh) for dj in range(kw)]
    outs = []
    for c in range(cout):
        acc = w_ref[c, 0] * wins[0]
        for t in range(1, kh * kw):
            acc = acc + w_ref[c, t] * wins[t]
        outs.append(acc)
    return outs


def _make_stats_kernel(cout, ho, wo, kh, kw):
    def kernel(x_ref, w_ref, stats_ref):
        convs = _stencil_channels(x_ref, w_ref, cout, ho, wo, kh, kw)
        sums, sqs = [], []
        for c in range(cout):
            a = convs[c]
            sums.append(jnp.sum(a, keepdims=True))          # (1, 1)
            sqs.append(jnp.sum(a * a, keepdims=True))        # (1, 1)
        s_row = jnp.concatenate(sums, axis=1)                 # (1, Cout)
        q_row = jnp.concatenate(sqs, axis=1)                  # (1, Cout)
        stats_ref[0, :, :] = jnp.concatenate([s_row, q_row], axis=0)  # (2, Cout)
    return kernel


def _make_apply_kernel(cout, ho, wo, kh, kw):
    def kernel(x_ref, w_ref, ss_ref, o_ref):
        convs = _stencil_channels(x_ref, w_ref, cout, ho, wo, kh, kw)
        for c in range(cout):
            # Fused BatchNorm (scale/shift precomputed in the wrapper) + ReLU.
            y = convs[c] * ss_ref[0, c] + ss_ref[1, c]
            o_ref[0, c, :, :] = jnp.maximum(y, 0.0)
    return kernel


def cbr_forward(x, weight, bias, gamma, beta, *, kernel_size=3, stride=1, padding=1):
    """x: (N, H, W) f32.  weight: (Cout, 1, kh, kw).  Returns (N, Cout, H, W)."""
    assert stride == 1, "only stride=1 supported"
    del bias  # cancels exactly under training-mode BatchNorm mean subtraction

    N, H, W = x.shape
    Cout = weight.shape[0]
    KH = KW = kernel_size
    Hp, Wp = H + 2 * padding, W + 2 * padding
    Ho = H + 2 * padding - KH + 1
    Wo = W + 2 * padding - KW + 1

    xp = jnp.pad(x.astype(jnp.float32),
                 ((0, 0), (padding, padding), (padding, padding)))      # (N, Hp, Wp)
    w2 = weight.reshape(Cout, KH * KW).astype(jnp.float32)              # (Cout, K)

    cparams = pltpu.CompilerParams(
        dimension_semantics=("parallel",),
        vmem_limit_bytes=32 * 1024 * 1024,
    )

    # ---- phase 1: per-image per-channel (sum, sum_sq) of the conv output ----
    stats = pl.pallas_call(
        _make_stats_kernel(Cout, Ho, Wo, KH, KW),
        out_shape=jax.ShapeDtypeStruct((N, 2, Cout), jnp.float32),
        grid=(N,),
        in_specs=[
            pl.BlockSpec((1, Hp, Wp), lambda n: (n, 0, 0)),
            pl.BlockSpec(memory_space=pltpu.MemorySpace.SMEM),   # weights, loaded once
        ],
        out_specs=pl.BlockSpec((1, 2, Cout), lambda n: (n, 0, 0)),
        compiler_params=cparams,
    )(xp, w2)

    # ---- wrapper: tiny reduction + fold BN into one scale/shift per channel ----
    M = N * Ho * Wo
    ssum = jnp.sum(stats[:, 0, :], axis=0)                    # (Cout,)
    sqsum = jnp.sum(stats[:, 1, :], axis=0)                   # (Cout,)
    mean = ssum / M
    var = jnp.maximum(sqsum / M - mean * mean, 0.0)           # biased batch variance
    scale = gamma.astype(jnp.float32) * jax.lax.rsqrt(var + EPS)
    shift = beta.astype(jnp.float32) - mean * scale
    ss = jnp.stack([scale, shift], axis=0)                    # (2, Cout)

    # ---- phase 2: recompute stencil, apply fused scale/shift + ReLU ----
    out = pl.pallas_call(
        _make_apply_kernel(Cout, Ho, Wo, KH, KW),
        out_shape=jax.ShapeDtypeStruct((N, Cout, Ho, Wo), jnp.float32),
        grid=(N,),
        in_specs=[
            pl.BlockSpec((1, Hp, Wp), lambda n: (n, 0, 0)),
            pl.BlockSpec(memory_space=pltpu.MemorySpace.SMEM),   # weights
            pl.BlockSpec(memory_space=pltpu.MemorySpace.SMEM),   # fused (scale, shift)
        ],
        out_specs=pl.BlockSpec((1, Cout, Ho, Wo), lambda n: (n, 0, 0, 0)),
        compiler_params=cparams,
    )(xp, w2, ss)

    return jnp.squeeze(out)  # mimic the module's .squeeze()


def _reference(x, weight, bias, gamma, beta, padding):
    """Pure-JAX reference of the PyTorch module (training-mode BatchNorm)."""
    x4 = x[:, None, :, :].astype(jnp.float32)
    conv = jax.lax.conv_general_dilated(
        x4, weight.astype(jnp.float32), window_strides=(1, 1),
        padding=((padding, padding), (padding, padding)),
        dimension_numbers=("NCHW", "OIHW", "NCHW"))
    conv = conv + bias[None, :, None, None]
    mean = jnp.mean(conv, axis=(0, 2, 3), keepdims=True)
    var = jnp.mean((conv - mean) ** 2, axis=(0, 2, 3), keepdims=True)
    y = (conv - mean) * jax.lax.rsqrt(var + EPS)
    y = y * gamma[None, :, None, None] + beta[None, :, None, None]
    return jnp.squeeze(jnp.maximum(y, 0.0))


if __name__ == "__main__":
    key = jax.random.PRNGKey(0)
    k_x, k_w, k_b = jax.random.split(key, 3)

    N, H, W = 2, 16, 16
    Cin, Cout, ksize = 1, 4, 3

    x = jax.random.normal(k_x, (N, H, W), dtype=jnp.float32)

    # Deterministic parameter init (shapes per nn.Conv2d / nn.BatchNorm2d).
    fan_in = Cin * ksize * ksize
    bound = 1.0 / (fan_in ** 0.5)
    weight = jax.random.uniform(k_w, (Cout, Cin, ksize, ksize),
                                minval=-bound, maxval=bound, dtype=jnp.float32)
    bias = jax.random.uniform(k_b, (Cout,), minval=-bound, maxval=bound,
                              dtype=jnp.float32)
    gamma = jnp.ones((Cout,), dtype=jnp.float32)   # BatchNorm weight init
    beta = jnp.zeros((Cout,), dtype=jnp.float32)   # BatchNorm bias init

    out = cbr_forward(x, weight, bias, gamma, beta,
                      kernel_size=ksize, stride=1, padding=1)
    jax.block_until_ready(out)

    assert out.shape == (N, Cout, H, W), out.shape
    assert bool(jnp.all(out >= 0.0))   # ReLU sanity check

    ref = _reference(x, weight, bias, gamma, beta, padding=1)
    err = float(jnp.max(jnp.abs(out - ref)))
    assert err < 1e-3, f"max abs err vs reference: {err}"

    print("KERNEL_OK")
</pallas_src>

<mosaic_0001>
module attributes {stable_mosaic.version = 11 : i64} {
  func.func @kernel(%arg0: i32, %arg1: memref<1x18x18xf32, #tpu.memory_space<vmem>>, %arg2: memref<4x9xf32, #tpu.memory_space<smem>>, %arg3: memref<1x2x4xf32, #tpu.memory_space<vmem>>) attributes {dimension_semantics = [#tpu.dimension_semantics<parallel>], iteration_bounds = array<i64: 2>, scalar_prefetch = 0 : i64, scratch_operands = 0 : i64, tpu.core_type = #tpu.core_type<tc>, window_params = [{transform_indices = @transform_0, window_bounds = array<i64: 1, 18, 18>}, {transform_indices = @transform_1, window_bounds = array<i64: 4, 9>}, {transform_indices = @transform_2, window_bounds = array<i64: 1, 2, 4>}]} {
    %c0 = arith.constant 0 : index
    %c0_0 = arith.constant 0 : index
    %c0_1 = arith.constant 0 : index
    %0 = vector.load %arg1[%c0, %c0_0, %c0_1] : memref<1x18x18xf32, #tpu.memory_space<vmem>>, vector<1x16x16xf32>
    %1 = vector.shape_cast %0 : vector<1x16x16xf32> to vector<16x16xf32>
    %c0_2 = arith.constant 0 : index
    %c0_3 = arith.constant 0 : index
    %c1 = arith.constant 1 : index
    %2 = vector.load %arg1[%c0_2, %c0_3, %c1] : memref<1x18x18xf32, #tpu.memory_space<vmem>>, vector<1x16x16xf32>
    %3 = vector.shape_cast %2 : vector<1x16x16xf32> to vector<16x16xf32>
    %c0_4 = arith.constant 0 : index
    %c0_5 = arith.constant 0 : index
    %c2 = arith.constant 2 : index
    %4 = vector.load %arg1[%c0_4, %c0_5, %c2] : memref<1x18x18xf32, #tpu.memory_space<vmem>>, vector<1x16x16xf32>
    %5 = vector.shape_cast %4 : vector<1x16x16xf32> to vector<16x16xf32>
    %c0_6 = arith.constant 0 : index
    %c1_7 = arith.constant 1 : index
    %c0_8 = arith.constant 0 : index
    %6 = vector.load %arg1[%c0_6, %c1_7, %c0_8] : memref<1x18x18xf32, #tpu.memory_space<vmem>>, vector<1x16x16xf32>
    %7 = vector.shape_cast %6 : vector<1x16x16xf32> to vector<16x16xf32>
    %c0_9 = arith.constant 0 : index
    %c1_10 = arith.constant 1 : index
    %c1_11 = arith.constant 1 : index
    %8 = vector.load %arg1[%c0_9, %c1_10, %c1_11] : memref<1x18x18xf32, #tpu.memory_space<vmem>>, vector<1x16x16xf32>
    %9 = vector.shape_cast %8 : vector<1x16x16xf32> to vector<16x16xf32>
    %c0_12 = arith.constant 0 : index
    %c1_13 = arith.constant 1 : index
    %c2_14 = arith.constant 2 : index
    %10 = vector.load %arg1[%c0_12, %c1_13, %c2_14] : memref<1x18x18xf32, #tpu.memory_space<vmem>>, vector<1x16x16xf32>
    %11 = vector.shape_cast %10 : vector<1x16x16xf32> to vector<16x16xf32>
    %c0_15 = arith.constant 0 : index
    %c2_16 = arith.constant 2 : index
    %c0_17 = arith.constant 0 : index
    %12 = vector.load %arg1[%c0_15, %c2_16, %c0_17] : memref<1x18x18xf32, #tpu.memory_space<vmem>>, vector<1x16x16xf32>
    %13 = vector.shape_cast %12 : vector<1x16x16xf32> to vector<16x16xf32>
    %c0_18 = arith.constant 0 : index
    %c2_19 = arith.constant 2 : index
    %c1_20 = arith.constant 1 : index
    %14 = vector.load %arg1[%c0_18, %c2_19, %c1_20] : memref<1x18x18xf32, #tpu.memory_space<vmem>>, vector<1x16x16xf32>
    %15 = vector.shape_cast %14 : vector<1x16x16xf32> to vector<16x16xf32>
    %c0_21 = arith.constant 0 : index
    %c2_22 = arith.constant 2 : index
    %c2_23 = arith.constant 2 : index
    %16 = vector.load %arg1[%c0_21, %c2_22, %c2_23] : memref<1x18x18xf32, #tpu.memory_space<vmem>>, vector<1x16x16xf32>
    %17 = vector.shape_cast %16 : vector<1x16x16xf32> to vector<16x16xf32>
    %c0_24 = arith.constant 0 : index
    %c0_25 = arith.constant 0 : index
    %18 = memref.load %arg2[%c0_24, %c0_25] : memref<4x9xf32, #tpu.memory_space<smem>>
    %19 = vector.broadcast %18 : f32 to vector<16x16xf32>
    %20 = arith.mulf %19, %1 : vector<16x16xf32>
    %c0_26 = arith.constant 0 : index
    %c1_27 = arith.constant 1 : index
    %21 = memref.load %arg2[%c0_26, %c1_27] : memref<4x9xf32, #tpu.memory_space<smem>>
    %22 = vector.broadcast %21 : f32 to vector<16x16xf32>
    %23 = arith.mulf %22, %3 : vector<16x16xf32>
    %24 = arith.addf %20, %23 : vector<16x16xf32>
    %c0_28 = arith.constant 0 : index
    %c2_29 = arith.constant 2 : index
    %25 = memref.load %arg2[%c0_28, %c2_29] : memref<4x9xf32, #tpu.memory_space<smem>>
    %26 = vector.broadcast %25 : f32 to vector<16x16xf32>
    %27 = arith.mulf %26, %5 : vector<16x16xf32>
    %28 = arith.addf %24, %27 : vector<16x16xf32>
    %c0_30 = arith.constant 0 : index
    %c3 = arith.constant 3 : index
    %29 = memref.load %arg2[%c0_30, %c3] : memref<4x9xf32, #tpu.memory_space<smem>>
    %30 = vector.broadcast %29 : f32 to vector<16x16xf32>
    %31 = arith.mulf %30, %7 : vector<16x16xf32>
    %32 = arith.addf %28, %31 : vector<16x16xf32>
    %c0_31 = arith.constant 0 : index
    %c4 = arith.constant 4 : index
    %33 = memref.load %arg2[%c0_31, %c4] : memref<4x9xf32, #tpu.memory_space<smem>>
    %34 = vector.broadcast %33 : f32 to vector<16x16xf32>
    %35 = arith.mulf %34, %9 : vector<16x16xf32>
    %36 = arith.addf %32, %35 : vector<16x16xf32>
    %c0_32 = arith.constant 0 : index
    %c5 = arith.constant 5 : index
    %37 = memref.load %arg2[%c0_32, %c5] : memref<4x9xf32, #tpu.memory_space<smem>>
    %38 = vector.broadcast %37 : f32 to vector<16x16xf32>
    %39 = arith.mulf %38, %11 : vector<16x16xf32>
    %40 = arith.addf %36, %39 : vector<16x16xf32>
    %c0_33 = arith.constant 0 : index
    %c6 = arith.constant 6 : index
    %41 = memref.load %arg2[%c0_33, %c6] : memref<4x9xf32, #tpu.memory_space<smem>>
    %42 = vector.broadcast %41 : f32 to vector<16x16xf32>
    %43 = arith.mulf %42, %13 : vector<16x16xf32>
    %44 = arith.addf %40, %43 : vector<16x16xf32>
    %c0_34 = arith.constant 0 : index
    %c7 = arith.constant 7 : index
    %45 = memref.load %arg2[%c0_34, %c7] : memref<4x9xf32, #tpu.memory_space<smem>>
    %46 = vector.broadcast %45 : f32 to vector<16x16xf32>
    %47 = arith.mulf %46, %15 : vector<16x16xf32>
    %48 = arith.addf %44, %47 : vector<16x16xf32>
    %c0_35 = arith.constant 0 : index
    %c8 = arith.constant 8 : index
    %49 = memref.load %arg2[%c0_35, %c8] : memref<4x9xf32, #tpu.memory_space<smem>>
    %50 = vector.broadcast %49 : f32 to vector<16x16xf32>
    %51 = arith.mulf %50, %17 : vector<16x16xf32>
    %52 = arith.addf %48, %51 : vector<16x16xf32>
    %c1_36 = arith.constant 1 : index
    %c0_37 = arith.constant 0 : index
    %53 = memref.load %arg2[%c1_36, %c0_37] : memref<4x9xf32, #tpu.memory_space<smem>>
    %54 = vector.broadcast %53 : f32 to vector<16x16xf32>
    %55 = arith.mulf %54, %1 : vector<16x16xf32>
    %c1_38 = arith.constant 1 : index
    %c1_39 = arith.constant 1 : index
    %56 = memref.load %arg2[%c1_38, %c1_39] : memref<4x9xf32, #tpu.memory_space<smem>>
    %57 = vector.broadcast %56 : f32 to vector<16x16xf32>
    %58 = arith.mulf %57, %3 : vector<16x16xf32>
    %59 = arith.addf %55, %58 : vector<16x16xf32>
    %c1_40 = arith.constant 1 : index
    %c2_41 = arith.constant 2 : index
    %60 = memref.load %arg2[%c1_40, %c2_41] : memref<4x9xf32, #tpu.memory_space<smem>>
    %61 = vector.broadcast %60 : f32 to vector<16x16xf32>
    %62 = arith.mulf %61, %5 : vector<16x16xf32>
    %63 = arith.addf %59, %62 : vector<16x16xf32>
    %c1_42 = arith.constant 1 : index
    %c3_43 = arith.constant 3 : index
    %64 = memref.load %arg2[%c1_42, %c3_43] : memref<4x9xf32, #tpu.memory_space<smem>>
    %65 = vector.broadcast %64 : f32 to vector<16x16xf32>
    %66 = arith.mulf %65, %7 : vector<16x16xf32>
    %67 = arith.addf %63, %66 : vector<16x16xf32>
    %c1_44 = arith.constant 1 : index
    %c4_45 = arith.constant 4 : index
    %68 = memref.load %arg2[%c1_44, %c4_45] : memref<4x9xf32, #tpu.memory_space<smem>>
    %69 = vector.broadcast %68 : f32 to vector<16x16xf32>
    %70 = arith.mulf %69, %9 : vector<16x16xf32>
    %71 = arith.addf %67, %70 : vector<16x16xf32>
    %c1_46 = arith.constant 1 : index
    %c5_47 = arith.constant 5 : index
    %72 = memref.load %arg2[%c1_46, %c5_47] : memref<4x9xf32, #tpu.memory_space<smem>>
    %73 = vector.broadcast %72 : f32 to vector<16x16xf32>
    %74 = arith.mulf %73, %11 : vector<16x16xf32>
    %75 = arith.addf %71, %74 : vector<16x16xf32>
    %c1_48 = arith.constant 1 : index
    %c6_49 = arith.constant 6 : index
    %76 = memref.load %arg2[%c1_48, %c6_49] : memref<4x9xf32, #tpu.memory_space<smem>>
    %77 = vector.broadcast %76 : f32 to vector<16x16xf32>
    %78 = arith.mulf %77, %13 : vector<16x16xf32>
    %79 = arith.addf %75, %78 : vector<16x16xf32>
    %c1_50 = arith.constant 1 : index
    %c7_51 = arith.constant 7 : index
    %80 = memref.load %arg2[%c1_50, %c7_51] : memref<4x9xf32, #tpu.memory_space<smem>>
    %81 = vector.broadcast %80 : f32 to vector<16x16xf32>
    %82 = arith.mulf %81, %15 : vector<16x16xf32>
    %83 = arith.addf %79, %82 : vector<16x16xf32>
    %c1_52 = arith.constant 1 : index
    %c8_53 = arith.constant 8 : index
    %84 = memref.load %arg2[%c1_52, %c8_53] : memref<4x9xf32, #tpu.memory_space<smem>>
    %85 = vector.broadcast %84 : f32 to vector<16x16xf32>
    %86 = arith.mulf %85, %17 : vector<16x16xf32>
    %87 = arith.addf %83, %86 : vector<16x16xf32>
    %c2_54 = arith.constant 2 : index
    %c0_55 = arith.constant 0 : index
    %88 = memref.load %arg2[%c2_54, %c0_55] : memref<4x9xf32, #tpu.memory_space<smem>>
    %89 = vector.broadcast %88 : f32 to vector<16x16xf32>
    %90 = arith.mulf %89, %1 : vector<16x16xf32>
    %c2_56 = arith.constant 2 : index
    %c1_57 = arith.constant 1 : index
    %91 = memref.load %arg2[%c2_56, %c1_57] : memref<4x9xf32, #tpu.memory_space<smem>>
    %92 = vector.broadcast %91 : f32 to vector<16x16xf32>
    %93 = arith.mulf %92, %3 : vector<16x16xf32>
    %94 = arith.addf %90, %93 : vector<16x16xf32>
    %c2_58 = arith.constant 2 : index
    %c2_59 = arith.constant 2 : index
    %95 = memref.load %arg2[%c2_58, %c2_59] : memref<4x9xf32, #tpu.memory_space<smem>>
    %96 = vector.broadcast %95 : f32 to vector<16x16xf32>
    %97 = arith.mulf %96, %5 : vector<16x16xf32>
    %98 = arith.addf %94, %97 : vector<16x16xf32>
    %c2_60 = arith.constant 2 : index
    %c3_61 = arith.constant 3 : index
    %99 = memref.load %arg2[%c2_60, %c3_61] : memref<4x9xf32, #tpu.memory_space<smem>>
    %100 = vector.broadcast %99 : f32 to vector<16x16xf32>
    %101 = arith.mulf %100, %7 : vector<16x16xf32>
    %102 = arith.addf %98, %101 : vector<16x16xf32>
    %c2_62 = arith.constant 2 : index
    %c4_63 = arith.constant 4 : index
    %103 = memref.load %arg2[%c2_62, %c4_63] : memref<4x9xf32, #tpu.memory_space<smem>>
    %104 = vector.broadcast %103 : f32 to vector<16x16xf32>
    %105 = arith.mulf %104, %9 : vector<16x16xf32>
    %106 = arith.addf %102, %105 : vector<16x16xf32>
    %c2_64 = arith.constant 2 : index
    %c5_65 = arith.constant 5 : index
    %107 = memref.load %arg2[%c2_64, %c5_65] : memref<4x9xf32, #tpu.memory_space<smem>>
    %108 = vector.broadcast %107 : f32 to vector<16x16xf32>
    %109 = arith.mulf %108, %11 : vector<16x16xf32>
    %110 = arith.addf %106, %109 : vector<16x16xf32>
    %c2_66 = arith.constant 2 : index
    %c6_67 = arith.constant 6 : index
    %111 = memref.load %arg2[%c2_66, %c6_67] : memref<4x9xf32, #tpu.memory_space<smem>>
    %112 = vector.broadcast %111 : f32 to vector<16x16xf32>
    %113 = arith.mulf %112, %13 : vector<16x16xf32>
    %114 = arith.addf %110, %113 : vector<16x16xf32>
    %c2_68 = arith.constant 2 : index
    %c7_69 = arith.constant 7 : index
    %115 = memref.load %arg2[%c2_68, %c7_69] : memref<4x9xf32, #tpu.memory_space<smem>>
    %116 = vector.broadcast %115 : f32 to vector<16x16xf32>
    %117 = arith.mulf %116, %15 : vector<16x16xf32>
    %118 = arith.addf %114, %117 : vector<16x16xf32>
    %c2_70 = arith.constant 2 : index
    %c8_71 = arith.constant 8 : index
    %119 = memref.load %arg2[%c2_70, %c8_71] : memref<4x9xf32, #tpu.memory_space<smem>>
    %120 = vector.broadcast %119 : f32 to vector<16x16xf32>
    %121 = arith.mulf %120, %17 : vector<16x16xf32>
    %122 = arith.addf %118, %121 : vector<16x16xf32>
    %c3_72 = arith.constant 3 : index
    %c0_73 = arith.constant 0 : index
    %123 = memref.load %arg2[%c3_72, %c0_73] : memref<4x9xf32, #tpu.memory_space<smem>>
    %124 = vector.broadcast %123 : f32 to vector<16x16xf32>
    %125 = arith.mulf %124, %1 : vector<16x16xf32>
    %c3_74 = arith.constant 3 : index
    %c1_75 = arith.constant 1 : index
    %126 = memref.load %arg2[%c3_74, %c1_75] : memref<4x9xf32, #tpu.memory_space<smem>>
    %127 = vector.broadcast %126 : f32 to vector<16x16xf32>
    %128 = arith.mulf %127, %3 : vector<16x16xf32>
    %129 = arith.addf %125, %128 : vector<16x16xf32>
    %c3_76 = arith.constant 3 : index
    %c2_77 = arith.constant 2 : index
    %130 = memref.load %arg2[%c3_76, %c2_77] : memref<4x9xf32, #tpu.memory_space<smem>>
    %131 = vector.broadcast %130 : f32 to vector<16x16xf32>
    %132 = arith.mulf %131, %5 : vector<16x16xf32>
    %133 = arith.addf %129, %132 : vector<16x16xf32>
    %c3_78 = arith.constant 3 : index
    %c3_79 = arith.constant 3 : index
    %134 = memref.load %arg2[%c3_78, %c3_79] : memref<4x9xf32, #tpu.memory_space<smem>>
    %135 = vector.broadcast %134 : f32 to vector<16x16xf32>
    %136 = arith.mulf %135, %7 : vector<16x16xf32>
    %137 = arith.addf %133, %136 : vector<16x16xf32>
    %c3_80 = arith.constant 3 : index
    %c4_81 = arith.constant 4 : index
    %138 = memref.load %arg2[%c3_80, %c4_81] : memref<4x9xf32, #tpu.memory_space<smem>>
    %139 = vector.broadcast %138 : f32 to vector<16x16xf32>
    %140 = arith.mulf %139, %9 : vector<16x16xf32>
    %141 = arith.addf %137, %140 : vector<16x16xf32>
    %c3_82 = arith.constant 3 : index
    %c5_83 = arith.constant 5 : index
    %142 = memref.load %arg2[%c3_82, %c5_83] : memref<4x9xf32, #tpu.memory_space<smem>>
    %143 = vector.broadcast %142 : f32 to vector<16x16xf32>
    %144 = arith.mulf %143, %11 : vector<16x16xf32>
    %145 = arith.addf %141, %144 : vector<16x16xf32>
    %c3_84 = arith.constant 3 : index
    %c6_85 = arith.constant 6 : index
    %146 = memref.load %arg2[%c3_84, %c6_85] : memref<4x9xf32, #tpu.memory_space<smem>>
    %147 = vector.broadcast %146 : f32 to vector<16x16xf32>
    %148 = arith.mulf %147, %13 : vector<16x16xf32>
    %149 = arith.addf %145, %148 : vector<16x16xf32>
    %c3_86 = arith.constant 3 : index
    %c7_87 = arith.constant 7 : index
    %150 = memref.load %arg2[%c3_86, %c7_87] : memref<4x9xf32, #tpu.memory_space<smem>>
    %151 = vector.broadcast %150 : f32 to vector<16x16xf32>
    %152 = arith.mulf %151, %15 : vector<16x16xf32>
    %153 = arith.addf %149, %152 : vector<16x16xf32>
    %c3_88 = arith.constant 3 : index
    %c8_89 = arith.constant 8 : index
    %154 = memref.load %arg2[%c3_88, %c8_89] : memref<4x9xf32, #tpu.memory_space<smem>>
    %155 = vector.broadcast %154 : f32 to vector<16x16xf32>
    %156 = arith.mulf %155, %17 : vector<16x16xf32>
    %157 = arith.addf %153, %156 : vector<16x16xf32>
    %158 = vector.shape_cast %52 : vector<16x16xf32> to vector<1x16x16xf32>
    %cst = arith.constant dense<0.000000e+00> : vector<1xf32>
    %159 = vector.multi_reduction <add>, %158, %cst [1, 2] : vector<1x16x16xf32> to vector<1xf32>
    %160 = vector.shape_cast %159 : vector<1xf32> to vector<1x1x1xf32>
    %161 = vector.extract %160[0, 0, 0] : f32 from vector<1x1x1xf32>
    %162 = vector.broadcast %161 : f32 to vector<1x1xf32>
    %163 = arith.mulf %52, %52 : vector<16x16xf32>
    %164 = vector.shape_cast %163 : vector<16x16xf32> to vector<1x16x16xf32>
    %cst_90 = arith.constant dense<0.000000e+00> : vector<1xf32>
    %165 = vector.multi_reduction <add>, %164, %cst_90 [1, 2] : vector<1x16x16xf32> to vector<1xf32>
    %166 = vector.shape_cast %165 : vector<1xf32> to vector<1x1x1xf32>
    %167 = vector.extract %166[0, 0, 0] : f32 from vector<1x1x1xf32>
    %168 = vector.broadcast %167 : f32 to vector<1x1xf32>
    %169 = vector.shape_cast %87 : vector<16x16xf32> to vector<1x16x16xf32>
    %cst_91 = arith.constant dense<0.000000e+00> : vector<1xf32>
    %170 = vector.multi_reduction <add>, %169, %cst_91 [1, 2] : vector<1x16x16xf32> to vector<1xf32>
    %171 = vector.shape_cast %170 : vector<1xf32> to vector<1x1x1xf32>
    %172 = vector.extract %171[0, 0, 0] : f32 from vector<1x1x1xf32>
    %173 = vector.broadcast %172 : f32 to vector<1x1xf32>
    %174 = arith.mulf %87, %87 : vector<16x16xf32>
    %175 = vector.shape_cast %174 : vector<16x16xf32> to vector<1x16x16xf32>
    %cst_92 = arith.constant dense<0.000000e+00> : vector<1xf32>
    %176 = vector.multi_reduction <add>, %175, %cst_92 [1, 2] : vector<1x16x16xf32> to vector<1xf32>
    %177 = vector.shape_cast %176 : vector<1xf32> to vector<1x1x1xf32>
    %178 = vector.extract %177[0, 0, 0] : f32 from vector<1x1x1xf32>
    %179 = vector.broadcast %178 : f32 to vector<1x1xf32>
    %180 = vector.shape_cast %122 : vector<16x16xf32> to vector<1x16x16xf32>
    %cst_93 = arith.constant dense<0.000000e+00> : vector<1xf32>
    %181 = vector.multi_reduction <add>, %180, %cst_93 [1, 2] : vector<1x16x16xf32> to vector<1xf32>
    %182 = vector.shape_cast %181 : vector<1xf32> to vector<1x1x1xf32>
    %183 = vector.extract %182[0, 0, 0] : f32 from vector<1x1x1xf32>
    %184 = vector.broadcast %183 : f32 to vector<1x1xf32>
    %185 = arith.mulf %122, %122 : vector<16x16xf32>
    %186 = vector.shape_cast %185 : vector<16x16xf32> to vector<1x16x16xf32>
    %cst_94 = arith.constant dense<0.000000e+00> : vector<1xf32>
    %187 = vector.multi_reduction <add>, %186, %cst_94 [1, 2] : vector<1x16x16xf32> to vector<1xf32>
    %188 = vector.shape_cast %187 : vector<1xf32> to vector<1x1x1xf32>
    %189 = vector.extract %188[0, 0, 0] : f32 from vector<1x1x1xf32>
    %190 = vector.broadcast %189 : f32 to vector<1x1xf32>
    %191 = vector.shape_cast %157 : vector<16x16xf32> to vector<1x16x16xf32>
    %cst_95 = arith.constant dense<0.000000e+00> : vector<1xf32>
    %192 = vector.multi_reduction <add>, %191, %cst_95 [1, 2] : vector<1x16x16xf32> to vector<1xf32>
    %193 = vector.shape_cast %192 : vector<1xf32> to vector<1x1x1xf32>
    %194 = vector.extract %193[0, 0, 0] : f32 from vector<1x1x1xf32>
    %195 = vector.broadcast %194 : f32 to vector<1x1xf32>
    %196 = arith.mulf %157, %157 : vector<16x16xf32>
    %197 = vector.shape_cast %196 : vector<16x16xf32> to vector<1x16x16xf32>
    %cst_96 = arith.constant dense<0.000000e+00> : vector<1xf32>
    %198 = vector.multi_reduction <add>, %197, %cst_96 [1, 2] : vector<1x16x16xf32> to vector<1xf32>
    %199 = vector.shape_cast %198 : vector<1xf32> to vector<1x1x1xf32>
    %200 = vector.extract %199[0, 0, 0] : f32 from vector<1x1x1xf32>
    %201 = vector.broadcast %200 : f32 to vector<1x1xf32>
    %202 = tpu.concatenate %162, %173, %184, %195 in 1 : vector<1x1xf32>, vector<1x1xf32>, vector<1x1xf32>, vector<1x1xf32> -> vector<1x4xf32>
    %203 = tpu.concatenate %168, %179, %190, %201 in 1 : vector<1x1xf32>, vector<1x1xf32>, vector<1x1xf32>, vector<1x1xf32> -> vector<1x4xf32>
    %204 = tpu.concatenate %202, %203 in 0 : vector<1x4xf32>, vector<1x4xf32> -> vector<2x4xf32>
    %c0_97 = arith.constant 0 : index
    %c0_98 = arith.constant 0 : index
    %c0_99 = arith.constant 0 : index
    %205 = vector.load %arg3[%c0_97, %c0_98, %c0_99] : memref<1x2x4xf32, #tpu.memory_space<vmem>>, vector<1x2x4xf32>
    %206 = vector.shape_cast %205 : vector<1x2x4xf32> to vector<2x4xf32>
    %207 = vector.shape_cast %204 : vector<2x4xf32> to vector<1x2x4xf32>
    tpu.vector_store %arg3[%c0_97, %c0_98, %c0_99], %207 {strides = array<i32>} : memref<1x2x4xf32, #tpu.memory_space<vmem>>, vector<1x2x4xf32>,
    return
  }
  func.func @transform_0(%arg0: i32) -> (i32, i32, i32) {
    %c0_i32 = arith.constant 0 : i32
    %c0_i32_0 = arith.constant 0 : i32
    %c0_i32_1 = arith.constant 0 : i32
    return %arg0, %c0_i32, %c0_i32_0 : i32, i32, i32
  }
  func.func @transform_1(%arg0: i32) -> (i32, i32) {
    %c0_i32 = arith.constant 0 : i32
    %c0_i32_0 = arith.constant 0 : i32
    %c0_i32_1 = arith.constant 0 : i32
    return %c0_i32, %c0_i32_0 : i32, i32
  }
  func.func @transform_2(%arg0: i32) -> (i32, i32, i32) {
    %c0_i32 = arith.constant 0 : i32
    %c0_i32_0 = arith.constant 0 : i32
    %c0_i32_1 = arith.constant 0 : i32
    return %arg0, %c0_i32, %c0_i32_0 : i32, i32, i32
  }
}

</mosaic_0001>

<bundles_post_ra>
// kernel: tpu_custom_call.1
= control target key start
LH: loop header
LB: loop body
LE: loop exit
PB: predicated region body
PF: predicated region fallthrough
CT: control target
= control target key end

     0   :  { %7 = vsyncpa [#allocation4], 0  ;;  %s1329_s0 = inlined_call_operand.vmem [shape: f32[2,18,18], index: 0, kind: input, shape index: {}]   ;;  %s1330_s1 = inlined_call_operand.vmem [shape: f32[4,9], index: 1, kind: input, shape index: {}]   ;;  %s1331_s2 = inlined_call_operand.hbm [shape: f32[2,2,4], index: 2, kind: output, shape index: {}]  }
   0x1   :  { %8 = vsyncpa [#allocation3], 0 }
   0x2   :  { %10 = vsyncpa [#allocation3 + $0x1], 0  ;;  %s995_s9 = smov 0   ;;  %s997_s10 = smov 0  }
   0x3   :  { %s999_s11 = smov 0   ;;  %s1001_s12 = smov 0  }
   0x4 LB: > { %s1016_s13 = sadd.s32 4294967295, %s975_s12   ;;  %s778_s14 = sadd.s32 4294967294, %s975_s12   ;;  %s975_s12 = sphi %s1001_s12, %s1337_s12   ;;  %s971_s11 = sphi %s999_s11, %s1336_s11   ;;  %s967_s10 = sphi %s997_s10, %s1335_s10   ;;  %s963_s9 = sphi %s995_s9, %s1334_s9  }
   0x5   : > { %s1020_s15 = sadd.s32 1, %s975_s12   ;;  %s70_s16 = sadd.s32 1, %s971_s11 }
   0x6   : > { %s67_s17 = ssub.s32 %s975_s12, %s1020_s15  ;;  %p80_p0 = scmp.ne.s32.totalorder %s971_s11, %s967_s10 }
   0x7   : > { %p68_p1 = scmp.eq.s32.totalorder %s67_s17, 0  ;;  %p81_p2 = scmp.eq.s32.totalorder %s1016_s13, 1 }
   0x8   : > { %p86_p3 = scmp.ne.s32.totalorder %s967_s10, %s963_s9  ;;  %p87_p4 = scmp.eq.s32.totalorder %s778_s14, 1 }
   0x9   : > { %s1031_s18 = scalar_select %p68_p1, %s971_s11, %s70_s16  }
   0xa   : > { %p1033_p5 = por %p81_p2, %p80_p0  ;;  %p1037_p6 = por %p87_p4, %p86_p3 }
   0xb   : > { %p779_p7 = scmp.ge.s32.totalorder %s975_s12, 1  ;;  %p94_p8 = scmp.lt.s32.totalorder %s975_s12, 3 }
   0xc   : > { %p856_p9 = scmp.eq.s32.totalorder %s1016_s13, 0  ;;  %s106_s23 = sshll.u32 %s1330_s1, 4  ;;  %s107_s23 = int_to_ptr.vmem [resolvable:$true] %s106_s23 }
   0xd   : > { %p95_p10 = pnand %p779_p7, %p94_p8  ;;  %s977_s24 = smov [#allocation2]  }
   0xf   : > { %p848_p11 = pneg %p95_p10  ;;  %127 = sbr.rel (%p95_p10) target bundleno = 469 (0x1d5), region = 28 }
  0x11   : > { %p849_p12 = pnand %p856_p9, %p848_p11 }
  0x13   : > { %851 = dma.vmem_to_smem (!%p849_p12), %s107_s23, 64, %s977_s24, [#allocation4]  }
  0x14   : > { %954 = dma.done.wait (%p856_p9), [#allocation4], 64  }
  0x15   : > { %956 = vsyncadd (%p856_p9), [#allocation4], 4294967232 }
  0x16   : > { %134 = sfence }
  0x17   : > { %p151_p13 = scmp.lt.s32.totalorder %s1016_s13, 1  ;;  %s795_s25 = sld [smem:[#allocation2 + $0x81]]  ;;  %vm562_vm0 = vcmask 130048   ;;  %vm675_vm1 = vcmask 7168   ;;  %vm677_vm2 = vcmask 15360   ;;  %vm679_vm3 = vcmask 23552  }
  0x18   : > { %s787_s27 = sld [smem:[#allocation2 + $0x2]]  ;;  %s978_s6 = smov 127   ;;  %vm687_vm4 = vcmask 1040384   ;;  %vm689_vm5 = vcmask 25600  }
  0x19   : > { %s152_s26 = scalar_select %p151_p13, %s1016_s13, 1 }
  0x1a   : > { %s786_s29 = sld [smem:[#allocation2 + $0x1]]  ;;  %s979_s8 = smov 126  }
  0x1b   : > { %s825_s28 = smul.u32 24, %s152_s26  ;;  %s804_s30 = sld [smem:[#allocation2 + $0x101]] }
  0x1c   : > { %s796_s7 = sld [smem:[#allocation2 + $0x82]] }
  0x1d   : > { %s1052_s5 = scalar_lea.vmem %s1329_s0, %s825_s28  ;;  %v267_v1 = vstv %s795_s25  ;;  %s813_s14 = sld [smem:[#allocation2 + $0x181]] }
  0x1e   : > { %v1055_v0 = vld [vmem:[%s1052_s5 + $0x8] sm:$0xff]  ;;  %v1058_v2 = vld [vmem:[%s1052_s5] sm:$0xff]  ;;  %v181_v4 = vstv %s787_s27  ;;  %s814_s16 = sld [smem:[#allocation2 + $0x182]] }
  0x1f   : > { %v269_v3 = vmul.f32 %v267_v1, %v1055_v0  ;;  %v182_v5 = vmul.f32 %v181_v4, %v1058_v2  ;;  %v268_v10 = vmul.f32 %v267_v1, %v1058_v2  ;;  %v183_v14 = vmul.f32 %v181_v4, %v1055_v0  ;;  %s805_s17 = sld [smem:[#allocation2 + $0x102]]  ;;  %v1089_v25 = vld [vmem:[%s1052_s5 + $0x9] sm:$0xff]  ;;  %v1094_v27 = vld [vmem:[%s1052_s5 + $0x1] sm:$0xff] }
  0x20   : > { %v167_v6 = vstv %s786_s29  ;;  %s789_s21 = sld [smem:[#allocation2 + $0x4]]  ;;  %v1125_v49 = vld [vmem:[%s1052_s5 + $0x2] sm:$0xff]  ;;  %v1134_v55 = vld [vmem:[%s1052_s5 + $0xa] sm:$0xff] }
  0x21   : > { %274 = vrot.lane.b32.xlu2 %v269_v3, %s978_s6  ;;  %v168_v7 = vmul.f32 %v167_v6, %v1058_v2  ;;  %v367_v8 = vstv %s804_s30  ;;  %186 = vrot.lane.b32.xlu1 %v182_v5, %s979_s8  ;;  %v169_v11 = vmul.f32 %v167_v6, %v1055_v0  ;;  %s807_s22 = sld [smem:[#allocation2 + $0x104]] }
  0x22   : > { %v368_v9 = vmul.f32 %v367_v8, %v1058_v2  ;;  %v281_v12 = vstv %s796_s7  ;;  %v369_v15 = vmul.f32 %v367_v8, %v1055_v0  ;;  %s798_s23 = sld [smem:[#allocation2 + $0x84]] }
  0x23   : > { %172 = vrot.lane.b32.xlu0 %v168_v7, %s978_s6  ;;  %v282_v13 = vmul.f32 %v281_v12, %v1058_v2  ;;  %v467_v16 = vstv %s813_s14  ;;  %v283_v19 = vmul.f32 %v281_v12, %v1055_v0  ;;  %s790_s24 = sld [smem:[#allocation2 + $0x5]] }
  0x24   : > { %v469_v17 = vmul.f32 %v467_v16, %v1055_v0  ;;  %v468_v18 = vmul.f32 %v467_v16, %v1058_v2  ;;  %v481_v20 = vstv %s814_s16  ;;  %s816_s25 = sld [smem:[#allocation2 + $0x184]] }
  0x25   : > { %v381_v21 = vstv %s805_s17  ;;  %v482_v22 = vmul.f32 %v481_v20, %v1058_v2  ;;  %v483_v30 = vmul.f32 %v481_v20, %v1055_v0  ;;  %s799_s26 = sld [smem:[#allocation2 + $0x85]] }
  0x26   : > { %v383_v23 = vmul.f32 %v381_v21, %v1055_v0  ;;  %v382_v24 = vmul.f32 %v381_v21, %v1058_v2  ;;  %v201_v26 = vstv %s789_s21  ;;  %s808_s27 = sld [smem:[#allocation2 + $0x105]] }
  0x27   : > { %v203_v28 = vmul.f32 %v201_v26, %v1089_v25  ;;  %v202_v29 = vmul.f32 %v201_v26, %v1094_v27  ;;  %v401_v31 = vstv %s807_s22  ;;  %s792_s28 = sld [smem:[#allocation2 + $0x7]] }
  0x28   : > { %v301_v32 = vstv %s798_s23  ;;  %v402_v33 = vmul.f32 %v401_v31, %v1094_v27  ;;  %v403_v39 = vmul.f32 %v401_v31, %v1089_v25  ;;  %s817_s29 = sld [smem:[#allocation2 + $0x185]] }
  0x29   : > { %372 = vrot.lane.b32.xlu2 %v368_v9, %s978_s6  ;;  %272 = vrot.lane.b32.xlu1 %v268_v10, %s978_s6  ;;  %v303_v34 = vmul.f32 %v301_v32, %v1089_v25  ;;  %v302_v35 = vmul.f32 %v301_v32, %v1094_v27  ;;  %v215_v36 = vstv %s790_s24  ;;  %s801_s30 = sld [smem:[#allocation2 + $0x87]] }
  0x2a   : > { %v217_v37 = vmul.f32 %v215_v36, %v1089_v25  ;;  %v216_v38 = vmul.f32 %v215_v36, %v1094_v27  ;;  %v501_v40 = vstv %s816_s25  ;;  %s793_s3 = sld [smem:[#allocation2 + $0x8]] }
  0x2b   : > { %174 = vrot.lane.b32.xlu0 %v169_v11, %s978_s6  ;;  %v315_v41 = vstv %s799_s26  ;;  %v502_v42 = vmul.f32 %v501_v40, %v1094_v27  ;;  %v503_v48 = vmul.f32 %v501_v40, %v1089_v25  ;;  %s810_s4 = sld [smem:[#allocation2 + $0x107]] }
  0x2c   : > { %v317_v43 = vmul.f32 %v315_v41, %v1089_v25  ;;  %v316_v44 = vmul.f32 %v315_v41, %v1094_v27  ;;  %v415_v45 = vstv %s808_s27  ;;  %s802_s7 = sld [smem:[#allocation2 + $0x88]] }
  0x2d   : > { %v417_v46 = vmul.f32 %v415_v45, %v1089_v25  ;;  %v416_v47 = vmul.f32 %v415_v45, %v1094_v27  ;;  %v235_v50 = vstv %s792_s28  ;;  %s819_s5 = sld [smem:[#allocation2 + $0x187]] }
  0x2e   : > { %v515_v51 = vstv %s817_s29  ;;  %v236_v52 = vmul.f32 %v235_v50, %v1125_v49  ;;  %v237_v59 = vmul.f32 %v235_v50, %v1134_v55  ;;  %s811_s14 = sld [smem:[#allocation2 + $0x108]] }
  0x2f   : > { %v517_v53 = vmul.f32 %v515_v51, %v1089_v25  ;;  %v516_v54 = vmul.f32 %v515_v51, %v1094_v27  ;;  %v335_v56 = vstv %s801_s30  ;;  %s1157_s16 = sld [smem:[#allocation2]] }
  0x30   : > { %v337_v57 = vmul.f32 %v335_v56, %v1134_v55  ;;  %v336_v58 = vmul.f32 %v335_v56, %v1125_v49  ;;  %v249_v60 = vstv %s793_s3  ;;  %s820_s17 = sld [smem:[#allocation2 + $0x188]] }
  0x31   : > { %286 = vrot.lane.b32.xlu2 %v282_v13, %s979_s8  ;;  %188 = vrot.lane.b32.xlu1 %v183_v14, %s979_s8  ;;  %v435_v62 = vstv %s810_s4  ;;  %v250_v63 = vmul.f32 %v249_v60, %v1125_v49  ;;  %v251_v8 = vmul.f32 %v249_v60, %v1134_v55  ;;  %s1166_s21 = sld [smem:[#allocation2 + $0x80]]  ;;  %s148_s4 = sand.u32 1, %s967_s10  }
  0x32   : > { %v437_v1 = vmul.f32 %v435_v62, %v1134_v55  ;;  %v436_v3 = vmul.f32 %v435_v62, %v1125_v49  ;;  %v349_v4 = vstv %s802_s7  ;;  %s803_s22 = sld [smem:[#allocation2 + $0x100]] }
  0x33   : > { %374 = vrot.lane.b32.xlu0 %v369_v15, %s978_s6  ;;  %v351_v6 = vmul.f32 %v349_v4, %v1134_v55  ;;  %v350_v7 = vmul.f32 %v349_v4, %v1125_v49  ;;  %v535_v10 = vstv %s819_s5  ;;  %s788_s23 = sld [smem:[#allocation2 + $0x3]] }
  0x34   : > { %v449_v11 = vstv %s811_s14  ;;  %v537_v13 = vmul.f32 %v535_v10, %v1134_v55  ;;  %v536_v14 = vmul.f32 %v535_v10, %v1125_v49  ;;  %s797_s24 = sld [smem:[#allocation2 + $0x83]] }
  0x35   : > { %v450_v12 = vmul.f32 %v449_v11, %v1125_v49  ;;  %v163_v15 = vstv %s1157_s16  ;;  %s1221_s25 = sld [smem:[#allocation2 + $0x86]]  ;;  %s1293_s16 = sshll.u32 %s148_s4, 1 }
  0x36   : > { %s1228_s26 = sld [smem:[#allocation2 + $0x6]] }
  0x37   : > { %v263_v26 = vstv %s1166_s21  ;;  %s1235_s27 = sld [smem:[#allocation2 + $0x183]]  ;;  %s822_s21 = sshll.u32 %s1016_s13, 1 }
  0x38   : > { %s1242_s28 = sld [smem:[#allocation2 + $0x106]]  ;;  %s150_s13 = scalar_lea.vmem [#allocation5], %s1293_s16 }
  0x39   : > { %474 = vrot.lane.b32.xlu2 %v469_v17, %s978_s6  ;;  %472 = vrot.lane.b32.xlu1 %v468_v18, %s978_s6  ;;  %v164_v17 = vmul.f32 %v163_v15, %v1058_v2  ;;  %v549_v18 = vstv %s820_s17  ;;  %s1244_s29 = sld [smem:[#allocation2 + $0x186]] }
  0x3a   : > { %v551_v20 = vmul.f32 %v549_v18, %v1134_v55 }
  0x3b   : > { %288 = vrot.lane.b32.xlu0 %v283_v19, %s979_s8 }
  0x41   : > { %486 = vrot.lane.b32.xlu2 %v482_v22, %s979_s8  ;;  %388 = vrot.lane.b32.xlu1 %v383_v23, %s979_s8  ;;  %v550_v23 = vmul.f32 %v549_v18, %v1125_v49 }
  0x43   : > { %386 = vrot.lane.b32.xlu0 %v382_v24, %s979_s8  ;;  %v451_v24 = vmul.f32 %v449_v11, %v1134_v55 }
  0x49   : > { %208 = vrot.lane.b32.xlu2 %v203_v28, %s978_s6  ;;  %206 = vrot.lane.b32.xlu1 %v202_v29, %s978_s6  ;;  %v264_v29 = vmul.f32 %v263_v26, %v1058_v2 }
  0x4b   : > { %488 = vrot.lane.b32.xlu0 %v483_v30, %s979_s8 }
  0x51   : > { %406 = vrot.lane.b32.xlu2 %v402_v33, %s978_s6  ;;  %308 = vrot.lane.b32.xlu1 %v303_v34, %s978_s6 }
  0x53   : > { %306 = vrot.lane.b32.xlu0 %v302_v35, %s978_s6  ;;  %v165_v35 = vmul.f32 %v163_v15, %v1055_v0 }
  0x59   : > { %222 = vrot.lane.b32.xlu2 %v217_v37, %s979_s8  ;;  %220 = vrot.lane.b32.xlu1 %v216_v38, %s979_s8 }
  0x5b   : > { %408 = vrot.lane.b32.xlu0 %v403_v39, %s978_s6 }
  0x61   : > { %506 = vrot.lane.b32.xlu2 %v502_v42, %s978_s6  ;;  %322 = vrot.lane.b32.xlu1 %v317_v43, %s979_s8  ;;  %v265_v42 = vmul.f32 %v263_v26, %v1055_v0 }
  0x63   : > { %320 = vrot.lane.b32.xlu0 %v316_v44, %s979_s8 }
  0x69   : > { %422 = vrot.lane.b32.xlu2 %v417_v46, %s979_s8  ;;  %420 = vrot.lane.b32.xlu1 %v416_v47, %s979_s8  ;;  %v363_v46 = vstv %s803_s22 }
  0x6a   : > { %v365_v51 = vmul.f32 %v363_v46, %v1055_v0 }
  0x6b   : > { %508 = vrot.lane.b32.xlu0 %v503_v48, %s978_s6 }
  0x71   : > { %240 = vrot.lane.b32.xlu2 %v236_v52, %s978_s6  ;;  %522 = vrot.lane.b32.xlu1 %v517_v53, %s979_s8  ;;  %v364_v53 = vmul.f32 %v363_v46, %v1058_v2 }
  0x73   : > { %520 = vrot.lane.b32.xlu0 %v516_v54, %s979_s8 }
  0x79   : > { %342 = vrot.lane.b32.xlu2 %v337_v57, %s978_s6  ;;  %340 = vrot.lane.b32.xlu1 %v336_v58, %s978_s6 }
  0x7b   : > { %v1143_v61 = vpop.permute.xlu2 %274  ;;  %242 = vrot.lane.b32.xlu0 %v237_v59, %s978_s6 }
  0x7c   : > { %v279_v44 = vadd.f32 %v1143_v61, %v265_v42  ;;  %v229_v42 = vstv %s1228_s26 }
  0x7d   : > { %v230_v46 = vmul.f32 %v229_v42, %v1125_v49 }
  0x81   : > { %254 = vrot.lane.b32.xlu2 %v250_v63, %s979_s8  ;;  %442 = vrot.lane.b32.xlu1 %v437_v1, %s978_s6 }
  0x83   : > { %v1151_v5 = vpop.permute.xlu2 %372  ;;  %440 = vrot.lane.b32.xlu0 %v436_v3, %s978_s6 }
  0x84   : > { %v378_v58 = vadd.f32 %v1151_v5, %v364_v53 }
  0x89   : > { %356 = vrot.lane.b32.xlu2 %v351_v6, %s979_s8  ;;  %354 = vrot.lane.b32.xlu1 %v350_v7, %s979_s8 }
  0x8b   : > { %v287_v9 = vpop.permute.xlu2 %286  ;;  %256 = vrot.lane.b32.xlu0 %v251_v8, %s979_s8 }
  0x91   : > { %454 = vrot.lane.b32.xlu2 %v450_v12, %s979_s8  ;;  %542 = vrot.lane.b32.xlu1 %v537_v13, %s978_s6 }
  0x93   : > { %v475_v16 = vpop.permute.xlu2 %474  ;;  %540 = vrot.lane.b32.xlu0 %v536_v14, %s978_s6  ;;  %v187_v19 = vpop.permute.xlu1 %186  ;;  %s1182_s6 = sld [smem:[#allocation2 + $0x180]] }
  0x95   : > { %v173_v21 = vpop.permute.xlu0 %172 }
  0x96   : > { %v178_v22 = vadd.f32 %v173_v21, %v164_v17  ;;  %v195_v21 = vstv %s788_s23  ;;  %s702_s23 = scalar_lea.hbm %s1331_s2, %s822_s21 }
  0x97   : > { %v196_v26 = vmul.f32 %v195_v21, %v1094_v27  ;;  %s706_s26 = sshll.u32 %s702_s23, 4  ;;  %s707_s26 = int_to_ptr.hbm [resolvable:$true] %s706_s26 }
  0x98   : > { %v1176_v28 = vadd.f32 %v187_v19, %v178_v22 }
  0x99   : > { %556 = vrot.lane.b32.xlu2 %v551_v20, %s979_s8  ;;  %554 = vrot.lane.b32.xlu1 %v550_v23, %s979_s8  ;;  %v463_v40 = vstv %s1182_s6  ;;  %v295_v23 = vstv %s797_s24 }
  0x9a   : > { %v464_v43 = vmul.f32 %v463_v40, %v1058_v2  ;;  %v465_v1 = vmul.f32 %v463_v40, %v1055_v0 }
  0x9b   : > { %456 = vrot.lane.b32.xlu0 %v451_v24, %s979_s8  ;;  %v487_v30 = vpop.permute.xlu2 %486  ;;  %v273_v31 = vpop.permute.xlu1 %272  ;;  %s1194_s8 = sld [smem:[#allocation2 + $0x103]]  ;;  %v297_v24 = vmul.f32 %v295_v23, %v1089_v25 }
  0x9c   : > { %v278_v32 = vadd.f32 %v273_v31, %v264_v29  ;;  %v479_v2 = vadd.f32 %v475_v16, %v465_v1  ;;  %v198_v31 = vadd.f32 %v196_v26, %v1176_v28 }
  0x9d   : > { %v175_v33 = vpop.permute.xlu0 %174 }
  0x9e   : > { %v1184_v34 = vadd.f32 %v287_v9, %v278_v32  ;;  %v179_v36 = vadd.f32 %v175_v33, %v165_v35  ;;  %v329_v32 = vstv %s1221_s25  ;;  %s704_s25 = sshll.u32 %s150_s13, 4  ;;  %s705_s25 = int_to_ptr.vmem [resolvable:$true] %s704_s25 }
  0xa1   : > { %v395_v56 = vstv %s1194_s8 }
  0xa2   : > { %v396_v60 = vmul.f32 %v395_v56, %v1094_v27 }
  0xa3   : > { %v189_v37 = vpop.permute.xlu1 %188  ;;  %v1190_v41 = vpop.permute.xlu2 %208 }
  0xa4   : > { %v1187_v38 = vadd.f32 %v189_v37, %v179_v36  ;;  %v296_v37 = vmul.f32 %v295_v23, %v1094_v27 }
  0xa5   : > { %v375_v39 = vpop.permute.xlu0 %374 }
  0xa6   : > { %v379_v57 = vadd.f32 %v375_v39, %v365_v51 }
  0xab   : > { %v473_v45 = vpop.permute.xlu1 %472  ;;  %v407_v54 = vpop.permute.xlu2 %406 }
  0xac   : > { %v478_v47 = vadd.f32 %v473_v45, %v464_v43  ;;  %v331_v43 = vmul.f32 %v329_v32, %v1134_v55 }
  0xad   : > { %v289_v48 = vpop.permute.xlu0 %288 }
  0xae   : > { %v293_v50 = vadd.f32 %v289_v48, %v279_v44  ;;  %v1198_v52 = vadd.f32 %v487_v30, %v478_v47  ;;  %v197_v30 = vmul.f32 %v195_v21, %v1089_v25  ;;  %v298_v47 = vadd.f32 %v296_v37, %v1184_v34 }
  0xaf   : > { %v495_v34 = vstv %s1235_s27  ;;  %s692_s27 = scalar_lea.sflag [#allocation3], %s148_s4 }
  0xb0   : > { %v299_v29 = vadd.f32 %v297_v24, %v293_v50  ;;  %v199_v45 = vadd.f32 %v197_v30, %v1187_v38  ;;  %v330_v38 = vmul.f32 %v329_v32, %v1125_v49 }
  0xb2   : > { %v213_v51 = vadd.f32 %v1190_v41, %v199_v45  ;;  %v397_v41 = vmul.f32 %v395_v56, %v1089_v25 }
  0xb3   : > { %v389_v59 = vpop.permute.xlu1 %388  ;;  %v223_v4 = vpop.permute.xlu2 %222 }
  0xb4   : > { %v1206_v61 = vadd.f32 %v389_v59, %v379_v57  ;;  %v227_v59 = vadd.f32 %v223_v4, %v213_v51  ;;  %v529_v4 = vstv %s1244_s29 }
  0xb5   : > { %v387_v62 = vpop.permute.xlu0 %386  ;;  %v531_v32 = vmul.f32 %v529_v4, %v1134_v55 }
  0xb6   : > { %v392_v63 = vadd.f32 %v387_v62, %v378_v58  ;;  %v231_v62 = vmul.f32 %v229_v42, %v1134_v55  ;;  %v399_v21 = vadd.f32 %v397_v41, %v1206_v61 }
  0xb8   : > { %v398_v3 = vadd.f32 %v396_v60, %v392_v63  ;;  %v497_v63 = vmul.f32 %v495_v34, %v1089_v25 }
  0xba   : > { %v1209_v6 = vadd.f32 %v407_v54, %v398_v3 }
  0xbb   : > { %v207_v7 = vpop.permute.xlu1 %206  ;;  %v1213_v5 = vpop.permute.xlu2 %506 }
  0xbc   : > { %v212_v40 = vadd.f32 %v207_v7, %v198_v31 }
  0xbd   : > { %v489_v8 = vpop.permute.xlu0 %488 }
  0xbe   : > { %v1211_v9 = vadd.f32 %v489_v8, %v479_v2 }
  0xc3   : > { %v309_v10 = vpop.permute.xlu1 %308  ;;  %v1217_v14 = vpop.permute.xlu2 %422 }
  0xc4   : > { %v313_v36 = vadd.f32 %v309_v10, %v299_v29  ;;  %v233_v10 = vadd.f32 %v231_v62, %v227_v59 }
  0xc5   : > { %v307_v11 = vpop.permute.xlu0 %306 }
  0xc6   : > { %v312_v48 = vadd.f32 %v307_v11, %v298_v47  ;;  %v499_v11 = vadd.f32 %v497_v63, %v1211_v9 }
  0xcb   : > { %v221_v12 = vpop.permute.xlu1 %220  ;;  %v241_v17 = vpop.permute.xlu2 %240 }
  0xcc   : > { %v226_v28 = vadd.f32 %v221_v12, %v212_v40 }
  0xcd   : > { %v1215_v13 = vpop.permute.xlu0 %408 }
  0xce   : > { %v232_v53 = vadd.f32 %v230_v46, %v226_v28 }
  0xd0   : > { %v246_v3 = vadd.f32 %v241_v17, %v232_v53  ;;  %v530_v53 = vmul.f32 %v529_v4, %v1125_v49 }
  0xd3   : > { %v323_v15 = vpop.permute.xlu1 %322  ;;  %v343_v19 = vpop.permute.xlu2 %342 }
  0xd4   : > { %v327_v44 = vadd.f32 %v323_v15, %v313_v36  ;;  %v429_v15 = vstv %s1242_s28  ;;  %s923_s28 = sshra.s32 %s707_s26, 4  ;;  %s924_s28 = int_to_ptr.hbm [resolvable:$true] %s923_s28 }
  0xd5   : > { %v321_v0 = vpop.permute.xlu0 %320  ;;  %s925_s29 = scalar_lea.hbm %s924_s28, 2  ;;  %p930_p3 = scmp.lt.s32.totalorder %s924_s28, %s1331_s2 }
  0xd6   : > { %v333_v50 = vadd.f32 %v331_v43, %v327_v44  ;;  %v326_v57 = vadd.f32 %v321_v0, %v312_v48  ;;  %v496_v0 = vmul.f32 %v495_v34, %v1094_v27  ;;  %p926_p0 = scmp.ne.s32.totalorder %s924_s28, %s925_s29 }
  0xd8   : > { %v347_v1 = vadd.f32 %v343_v19, %v333_v50  ;;  %v332_v7 = vadd.f32 %v330_v38, %v326_v57  ;;  %v430_v19 = vmul.f32 %v429_v15, %v1125_v49  ;;  %v498_v40 = vadd.f32 %v496_v0, %v1198_v52  ;;  %p927_p1 = pnand %p926_p0, %p1033_p5 }
  0xd9   : > { %v431_v38 = vmul.f32 %v429_v15, %v1134_v55 }
  0xda   : > { %v512_v46 = vadd.f32 %v1213_v5, %v498_v40  ;;  %p928_p2 = pneg %p927_p1 }
  0xdb   : > { %v1219_v18 = vpop.permute.xlu1 %420  ;;  %v255_v33 = vpop.permute.xlu2 %254 }
  0xdc   : > { %v260_v8 = vadd.f32 %v255_v33, %v246_v3  ;;  %v426_v9 = vadd.f32 %v1219_v18, %v1209_v6 }
  0xdd   : > { %v509_v16 = vpop.permute.xlu0 %508 }
  0xde   : > { %v513_v26 = vadd.f32 %v509_v16, %v499_v11  ;;  %v576_v29 = vmul.f32 %v260_v8, %v260_v8  ;;  %v563_v37 = vsel %vm562_vm0, %v260_v8, 0.0  ;;  %v432_v48 = vadd.f32 %v430_v19, %v426_v9 }
  0xe0   : > { %v578_v43 = vsel %vm562_vm0, %v576_v29, 0.0 }
  0xe3   : > { %v1223_v20 = vpop.permute.xlu1 %522  ;;  %v357_v60 = vpop.permute.xlu2 %356 }
  0xe4   : > { %v361_v2 = vadd.f32 %v357_v60, %v347_v1  ;;  %v527_v27 = vadd.f32 %v1223_v20, %v513_v26  ;;  %v413_v20 = vadd.f32 %v1215_v13, %v399_v21 }
  0xe5   : > { %v1225_v22 = vpop.permute.xlu0 %520 }
  0xe6   : > { %v605_v25 = vmul.f32 %v361_v2, %v361_v2  ;;  %v533_v28 = vadd.f32 %v531_v32, %v527_v27  ;;  %v526_v50 = vadd.f32 %v1225_v22, %v512_v46  ;;  %v427_v13 = vadd.f32 %v1217_v14, %v413_v20 }
  0xe8   : > { %v607_v42 = vsel %vm562_vm0, %v605_v25, 0.0  ;;  %v532_v60 = vadd.f32 %v530_v53, %v526_v50  ;;  %v433_v62 = vadd.f32 %v431_v38, %v427_v13 }
  0xeb   : > { %v341_v35 = vpop.permute.xlu1 %340  ;;  %v455_v30 = vpop.permute.xlu2 %454 }
  0xec   : > { %v346_v12 = vadd.f32 %v341_v35, %v332_v7  ;;  %v592_v35 = vsel %vm562_vm0, %v361_v2, 0.0 }
  0xed   : > { %v243_v39 = vpop.permute.xlu0 %242 }
  0xee   : > { %v247_v23 = vadd.f32 %v243_v39, %v233_v10 }
  0xf3   : > { %v1247_v54 = vpop.permute.xlu1 %442  ;;  %v557_v34 = vpop.permute.xlu2 %556 }
  0xf4   : > { %v447_v41 = vadd.f32 %v1247_v54, %v433_v62 }
  0xf5   : > { %v441_v58 = vpop.permute.xlu0 %440 }
  0xf6   : > { %v446_v59 = vadd.f32 %v441_v58, %v432_v48 }
  0xf8   : > { %v460_v63 = vadd.f32 %v455_v30, %v446_v59 }
  0xfa   : > { %v632_v7 = vmul.f32 %v460_v63, %v460_v63 }
  0xfb   : > { %v355_v24 = vpop.permute.xlu1 %354 }
  0xfc   : > { %v360_v56 = vadd.f32 %v355_v24, %v346_v12  ;;  %v619_v12 = vsel %vm562_vm0, %v460_v63, 0.0  ;;  %v634_v21 = vsel %vm562_vm0, %v632_v7, 0.0 }
  0xfd   : > { %v257_v17 = vpop.permute.xlu0 %256 }
  0xfe   : > { %v261_v31 = vadd.f32 %v257_v17, %v247_v23  ;;  %v604_v61 = vmul.f32 %v360_v56, %v360_v56  ;;  %v591_v33 = vsel %vm562_vm0, %v360_v56, 0.0 }
  0xff   : > { %v593_v36 = vadd.f32 %v592_v35, %v591_v33 }
 0x100   : > { %v577_v16 = vmul.f32 %v261_v31, %v261_v31  ;;  %v564_v39 = vsel %vm562_vm0, %v261_v31, 0.0  ;;  %v606_v18 = vsel %vm562_vm0, %v604_v61, 0.0 }
 0x101   : > { %v565_v6 = vadd.f32 %v564_v39, %v563_v37  ;;  %594 = vadd.xlane.f32.xlu2 %v593_v36  ;;  %v608_v45 = vadd.f32 %v607_v42, %v606_v18 }
 0x102   : > { %v579_v44 = vsel %vm562_vm0, %v577_v16, 0.0 }
 0x103   : > { %566 = vadd.xlane.f32.xlu0 %v565_v6  ;;  %v580_v47 = vadd.f32 %v579_v44, %v578_v43  ;;  %v543_v52 = vpop.permute.xlu1 %542 }
 0x104   : > { %v547_v51 = vadd.f32 %v543_v52, %v533_v28 }
 0x105   : > { %v541_v57 = vpop.permute.xlu0 %540  ;;  %581 = vadd.xlane.f32.xlu1 %v580_v47 }
 0x106   : > { %v561_v5 = vadd.f32 %v557_v34, %v547_v51  ;;  %v546_v1 = vadd.f32 %v541_v57, %v532_v60 }
 0x108   : > { %v661_v3 = vmul.f32 %v561_v5, %v561_v5  ;;  %v648_v55 = vsel %vm562_vm0, %v561_v5, 0.0 }
 0x109   : > { %609 = vadd.xlane.f32.xlu2 %v608_v45 }
 0x10a   : > { %v663_v0 = vsel %vm562_vm0, %v661_v3, 0.0 }
 0x10b   : > { %v555_v22 = vpop.permute.xlu1 %554 }
 0x10c   : > { %v560_v2 = vadd.f32 %v555_v22, %v546_v1 }
 0x10d   : > { %v457_v49 = vpop.permute.xlu0 %456 }
 0x10e   : > { %v461_v8 = vadd.f32 %v457_v49, %v447_v41  ;;  %v660_v10 = vmul.f32 %v560_v2, %v560_v2  ;;  %v647_v14 = vsel %vm562_vm0, %v560_v2, 0.0 }
 0x10f   : > { %v649_v11 = vadd.f32 %v648_v55, %v647_v14 }
 0x110   : > { %v633_v58 = vmul.f32 %v461_v8, %v461_v8  ;;  %v620_v15 = vsel %vm562_vm0, %v461_v8, 0.0  ;;  %v662_v54 = vsel %vm562_vm0, %v660_v10, 0.0 }
 0x111   : > { %v621_v4 = vadd.f32 %v620_v15, %v619_v12  ;;  %650 = vadd.xlane.f32.xlu2 %v649_v11  ;;  %v664_v19 = vadd.f32 %v663_v0, %v662_v54 }
 0x112   : > { %v635_v23 = vsel %vm562_vm0, %v633_v58, 0.0 }
 0x113   : > { %622 = vadd.xlane.f32.xlu0 %v621_v4  ;;  %v636_v24 = vadd.f32 %v635_v23, %v634_v21 }
 0x115   : > { %637 = vadd.xlane.f32.xlu1 %v636_v24 }
 0x11b   : > { %665 = vadd.xlane.f32.xlu0 %v664_v19 }
 0x174   : > { %v595_v26 = vpop.xlane.xlu2 %594 }
 0x175   : > { %v596_v25 = vrot.slane %v595_v26, 4 }
 0x176   : > { %v567_v56 = vpop.xlane.xlu0 %566 }
 0x177   : > { %v568_v17 = vrot.slane %v567_v56, 4  ;;  %v597_v29 = vadd.f32 %v596_v25, %v595_v26 }
 0x178   : > { %v582_v9 = vpop.xlane.xlu1 %581 }
 0x179   : > { %v569_v30 = vadd.f32 %v568_v17, %v567_v56  ;;  %v583_v31 = vrot.slane %v582_v9, 4  ;;  %v598_v32 = vrot.slane %v597_v29, 2 }
 0x17b   : > { %v570_v27 = vrot.slane %v569_v30, 2  ;;  %v584_v61 = vadd.f32 %v583_v31, %v582_v9  ;;  %v599_v33 = vadd.f32 %v598_v32, %v597_v29 }
 0x17c   : > { %v610_v16 = vpop.xlane.xlu2 %609 }
 0x17d   : > { %v585_v35 = vrot.slane %v584_v61, 2  ;;  %v571_v36 = vadd.f32 %v570_v27, %v569_v30  ;;  %v611_v37 = vrot.slane %v610_v16, 4  ;;  %v600_v18 = vrot.slane %v599_v33, 1 }
 0x17f   : > { %v572_v39 = vrot.slane %v571_v36, 1  ;;  %v586_v40 = vadd.f32 %v585_v35, %v584_v61  ;;  %v612_v6 = vadd.f32 %v611_v37, %v610_v16  ;;  %v601_v45 = vadd.f32 %v600_v18, %v599_v33 }
 0x181   : > { %v573_v42 = vadd.f32 %v572_v39, %v571_v36  ;;  %v587_v20 = vrot.slane %v586_v40, 1  ;;  %v613_v43 = vrot.slane %v612_v6, 2 }
 0x183   : > { %826 = vpush %v573_v42  ;;  %v588_v44 = vadd.f32 %v587_v20, %v586_v40  ;;  %v614_v46 = vadd.f32 %v613_v43, %v612_v6 }
 0x184   : > { %v651_v28 = vpop.xlane.xlu2 %650 }
 0x185   : > { %828 = vpush %v588_v44  ;;  %v652_v47 = vrot.slane %v651_v28, 4  ;;  %v615_v52 = vrot.slane %v614_v46, 1 }
 0x186   : > { %830 = vpush %v601_v45  ;;  %v623_v48 = vpop.xlane.xlu0 %622 }
 0x187   : > { %v624_v50 = vrot.slane %v623_v48, 4  ;;  %v653_v51 = vadd.f32 %v652_v47, %v651_v28  ;;  %v616_v57 = vadd.f32 %v615_v52, %v614_v46 }
 0x188   : > { %v638_v53 = vpop.xlane.xlu1 %637 }
 0x189   : > { %v625_v13 = vadd.f32 %v624_v50, %v623_v48  ;;  %v639_v38 = vrot.slane %v638_v53, 4  ;;  %v654_v59 = vrot.slane %v653_v51, 2  ;;  %832 = vpush %v616_v57 }
 0x18b   : > { %v626_v34 = vrot.slane %v625_v13, 2  ;;  %v640_v60 = vadd.f32 %v639_v38, %v638_v53  ;;  %v655_v5 = vadd.f32 %v654_v59, %v653_v51 }
 0x18d   : > { %v641_v62 = vrot.slane %v640_v60, 2  ;;  %v627_v63 = vadd.f32 %v626_v34, %v625_v13  ;;  %v656_v2 = vrot.slane %v655_v5, 1 }
 0x18e   : > { %v666_v1 = vpop.xlane.xlu0 %665 }
 0x18f   : > { %v642_v41 = vadd.f32 %v641_v62, %v640_v60  ;;  %v667_v22 = vrot.slane %v666_v1, 4  ;;  %v628_v3 = vrot.slane %v627_v63, 1  ;;  %v657_v55 = vadd.f32 %v656_v2, %v655_v5 }
 0x191   : > { %v668_v49 = vadd.f32 %v667_v22, %v666_v1  ;;  %v629_v7 = vadd.f32 %v628_v3, %v627_v63  ;;  %v643_v8 = vrot.slane %v642_v41, 1 }
 0x193   : > { %v669_v10 = vrot.slane %v668_v49, 2  ;;  %834 = vpush %v629_v7  ;;  %v644_v14 = vadd.f32 %v643_v8, %v642_v41 }
 0x195   : > { %v670_v58 = vadd.f32 %v669_v10, %v668_v49  ;;  %836 = vpush %v644_v14 }
 0x196   : > { %838 = vpush %v657_v55 }
 0x197   : > { %v671_v11 = vrot.slane %v670_v58, 1 }
 0x199   : > { %v672_v12 = vadd.f32 %v671_v11, %v670_v58 }
 0x19b   : > { %840 = vpush %v672_v12 }
 0x1b4   : > { %s827_s30 = spop %826 }
 0x1b5   : > { %v575_v21 = vstv %s827_s30 }
 0x1b6   : > { %s829_s3 = spop %828 }
 0x1b7   : > { %s831_s7 = spop %830  ;;  %v590_v23 = vstv %s829_s3 }
 0x1b8   : > { %v603_v15 = vstv %s831_s7  ;;  %s929_s7 = scalar_lea.hbm %s1331_s2, 4 }
 0x1b9   : > { %v676_v19 = vsel %vm675_vm1, %v575_v21, %v603_v15  ;;  %p931_p4 = scmp.lt.s32.totalorder %s929_s7, %s925_s29 }
 0x1ba   : > { %s833_s5 = spop %832 }
 0x1bb   : > { %v618_v4 = vstv %s833_s5  ;;  %p932_p7 = por %p931_p4, %p930_p3 }
 0x1bc   : > { %v681_v24 = vsel %vm675_vm1, %v590_v23, %v618_v4 }
 0x1bd   : > { %p933_p8 = pnand %p932_p7, %p928_p2 }
 0x1c4   : > { %s835_s14 = spop %834 }
 0x1c5   : > { %v631_v54 = vstv %s835_s14 }
 0x1c6   : > { %s837_s17 = spop %836  ;;  %v678_v26 = vsel %vm677_vm2, %v676_v19, %v631_v54 }
 0x1c7   : > { %v646_v0 = vstv %s837_s17  ;;  %s839_s6 = spop %838 }
 0x1c8   : > { %v682_v25 = vsel %vm677_vm2, %v681_v24, %v646_v0  ;;  %v659_v56 = vstv %s839_s6 }
 0x1c9   : > { %v680_v30 = vsel %vm679_vm3, %v678_v26, %v659_v56 }
 0x1cc   : > { %s841_s24 = spop %840 }
 0x1cd   : > { %v674_v17 = vstv %s841_s24 }
 0x1ce   : > { %v683_v29 = vsel %vm679_vm3, %v682_v25, %v674_v17 }
 0x1cf   : > { %v685_v9 = vrot.slane %v683_v29, 7 }
 0x1d1   : > { %v688_v31 = vsel %vm687_vm4, %v680_v30, %v685_v9 }
 0x1d2   : > { %690 = vst.msk [vmem:[%s150_s13] sm:$0x3] %vm689_vm5, %v688_v31 }
 0x1d3   : > { %936 = shalt.err (!%p933_p8)
}
 0x1d4   : > { %846 = dma.vmem_to_hbm [thread:$0]  (%p1033_p5), %s705_s25, 32, %s707_s26, %s692_s27  }
 0x1d5 PF: > { %p858_p9 = scmp.ge.s32.totalorder %s975_s12, 2  ;;  %s718_s4 = sand.u32 1, %s963_s9  }
 0x1d6   : > { %s719_s16 = scalar_lea.sflag [#allocation3], %s718_s4 }
 0x1d7   : > { %p853_p10 = pnand %p858_p9, %p1037_p6 }
 0x1d9   : > { %p854_p11 = pneg %p853_p10 }
 0x1db   : > { %958 = dma.done.wait (%p854_p11), %s719_s16, 32  }
 0x1dc   : > { %960 = vsyncadd (%p854_p11), %s719_s16, 4294967264  ;;  %p13_p12 = scmp.ge.s32.totalorder %s1020_s15, 4   ;;  %s1334_s9 = smov %s967_s10 }
 0x1dd   : > { %s1335_s10 = smov %s971_s11  ;;  %s1336_s11 = smov %s1031_s18 }
 0x1de   : > { %s1337_s12 = smov %s1020_s15  ;;  %15 = sbr.rel (!%p13_p12) target bundleno = 4 (0x4), region = 68 }
 0x1e3   :  { %725 = vsyncpa [#allocation3], 1 }
 0x1e4   :  { %727 = vsyncpa [#allocation3 + $0x1], 1 }
 0x1e5   :  { %728 = vsyncpa [#allocation4], 1 }
 0x1e6   :  { %730 = vsyncpa [#allocation4 + $0x1], 1 }

</bundles_post_ra>
